<compile_context>
chip_gen: v6e
topology: v6e:2x2x1
jax: 0.10.0
libtpu: 0.0.40
codegen_flags: <defaults>
</compile_context>

<pallas_src>
import functools

import jax
import jax.numpy as jnp
from jax.experimental import pallas as pl
from jax.experimental.pallas import tpu as pltpu

_EPS = 1e-5
_LANE = 128
_SUBLANE = 8
_MAX_TILE_B = 512   # big tiles amortize the ~0.35us/step grid overhead


def _round_up(v, m):
    return (v + m - 1) // m * m


def _nbytes(shape, dtype):
    n = 1
    for s in shape:
        n *= int(s)
    return n * jnp.dtype(dtype).itemsize


def _compiler_params(streaming_bytes, resident_bytes):
    # Streaming blocks are double-buffered by the auto-pipeliner; budget 2x for the
    # constant blocks as well.  An explicit limit matters once tiles get large
    # (v5e default scoped VMEM is only 16 MiB).
    need = 2 * streaming_bytes + 2 * resident_bytes
    limit = int(min(max(need * 3 // 2 + (4 << 20), 32 << 20), 100 << 20))
    return pltpu.CompilerParams(
        dimension_semantics=("parallel",),   # no cross-tile deps -> megacore shardable
        vmem_limit_bytes=limit)


def _mish(x):
    # mish(x) = x * tanh(softplus(x)) = x * (1 - 2 / ((1 + e^x)^2 + 1))
    # -> one EUP transcendental (exp) instead of exp + log1p + tanh.
    e = jnp.exp(x)
    t = e * (e + 2.0) + 2.0          # (1 + e)^2 + 1, inf-safe for large x
    return x * (1.0 - 2.0 / t)


# ---------------------------------------------------------------------------
# Stage A: u = x @ [w1 | w3]  (b1 dropped: cancelled by bn1 mean-subtract)
#          -> h1_pre tile, skip tile (x @ w3 + b3), per-tile sum/sumsq of h1_pre.
# ---------------------------------------------------------------------------
def _stage_a_kernel(n_mid_p, has_fc3, *refs):
    if has_fc3:
        x_ref, w_ref, b3_ref, h1_ref, skip_ref, s_ref, ss_ref = refs
    else:
        x_ref, w_ref, h1_ref, s_ref, ss_ref = refs

    u = jnp.dot(x_ref[...], w_ref[...], preferred_element_type=jnp.float32)
    h1 = u[:, :n_mid_p]
    h1_ref[...] = h1.astype(h1_ref.dtype)
    if has_fc3:
        skip_ref[...] = (u[:, n_mid_p:] + b3_ref[...]).astype(skip_ref.dtype)

    # Per-tile partial BN stats: reduce groups of 8 rows with VPU adds only
    # (no XLU column reduce, no cross-tile accumulator -> grid stays parallel).
    # Padded batch rows of x are zero and there is no bias, so they contribute 0.
    hp = h1.reshape(-1, _SUBLANE, n_mid_p)
    s_ref[...] = jnp.sum(hp, axis=0)
    ss_ref[...] = jnp.sum(hp * hp, axis=0)


# ---------------------------------------------------------------------------
# Stage B: h1_act = Mish(bn1(h1_pre)); h2_pre = h1_act @ w2 (b2 dropped);
#          per-tile sum/sumsq of h2_pre (padded-row contribution fixed in wrapper).
# ---------------------------------------------------------------------------
def _stage_b_kernel(h1_ref, scale_ref, shift_ref, w2_ref, h2_ref, s_ref, ss_ref):
    a = _mish(h1_ref[...].astype(jnp.float32) * scale_ref[...] + shift_ref[...])
    h2 = jnp.dot(a.astype(w2_ref.dtype), w2_ref[...],
                 preferred_element_type=jnp.float32)
    h2_ref[...] = h2.astype(h2_ref.dtype)

    hp = h2.reshape(-1, _SUBLANE, h2.shape[-1])
    s_ref[...] = jnp.sum(hp, axis=0)
    ss_ref[...] = jnp.sum(hp * hp, axis=0)


# ---------------------------------------------------------------------------
# Stage C: out = Mish(bn2(h2_pre) + skip)
# ---------------------------------------------------------------------------
def _stage_c_kernel(h2_ref, skip_ref, scale_ref, shift_ref, o_ref):
    y = (h2_ref[...].astype(jnp.float32) * scale_ref[...] + shift_ref[...]
         + skip_ref[...].astype(jnp.float32))
    o_ref[...] = _mish(y).astype(o_ref.dtype)


# ---------------------------------------------------------------------------
# Parameter init (mimics the PyTorch module) and one-time packing.
# ---------------------------------------------------------------------------
def init_dual_resnet_params(key, n_in, n_out, dtype=jnp.float32):
    n_mid = (n_in + n_out) // 2
    ks = jax.random.split(key, 6)

    def kaiming(k, fan_in, fan_out):
        std = (2.0 / fan_in) ** 0.5
        return (jax.random.normal(k, (fan_in, fan_out)) * std).astype(dtype)

    def lin_bias(k, fan_in, fan_out):
        bound = 1.0 / (fan_in ** 0.5)
        return jax.random.uniform(k, (1, fan_out), minval=-bound, maxval=bound).astype(dtype)

    return {
        "w1": kaiming(ks[0], n_in, n_mid), "b1": lin_bias(ks[1], n_in, n_mid),
        "w2": kaiming(ks[2], n_mid, n_out), "b2": lin_bias(ks[3], n_mid, n_out),
        "w3": kaiming(ks[4], n_in, n_out), "b3": lin_bias(ks[5], n_in, n_out),
        "g1": jnp.ones((1, n_mid), dtype), "be1": jnp.zeros((1, n_mid), dtype),
        "g2": jnp.ones((1, n_out), dtype), "be2": jnp.zeros((1, n_out), dtype),
    }


def pack_params(params, n_in, n_out, precision="fp32"):
    """One-time prep: pad feature dims to lane multiples (128), fuse fc1 + fc3,
    drop b1/b2 (cancelled by the following BatchNorm).  precision='bf16' stores
    the MXU operands and inter-stage activations in bfloat16."""
    n_mid = (n_in + n_out) // 2
    ni, nm, no = (_round_up(n_in, _LANE), _round_up(n_mid, _LANE),
                  _round_up(n_out, _LANE))
    same = (n_in == n_out)
    mm_dtype = jnp.bfloat16 if precision == "bf16" else jnp.float32
    act_dtype = jnp.bfloat16 if precision == "bf16" else jnp.float32

    def pad2(a, r, c, dtype=jnp.float32):
        a = a.astype(jnp.float32)
        return jnp.pad(a, ((0, r - a.shape[0]), (0, c - a.shape[1]))).astype(dtype)

    packed = {
        "same": same,
        "dims": (n_in, n_out, n_mid, ni, nm, no),
        "mm_dtype": mm_dtype, "act_dtype": act_dtype,
        "w2": pad2(params["w2"], nm, no, mm_dtype),
        "g1": pad2(params["g1"], 1, nm), "be1": pad2(params["be1"], 1, nm),
        "g2": pad2(params["g2"], 1, no), "be2": pad2(params["be2"], 1, no),
    }
    w1p = pad2(params["w1"], ni, nm)
    if same:
        packed["w13"] = w1p.astype(mm_dtype)                  # identity skip: no fc3
    else:
        w3p = pad2(params["w3"], ni, no)
        packed["w13"] = jnp.concatenate([w1p, w3p], axis=1).astype(mm_dtype)
        packed["b3"] = pad2(params["b3"], 1, no)
    return packed


# ---------------------------------------------------------------------------
# Forward pass.
# ---------------------------------------------------------------------------
def dual_resnet_forward(x, packed):
    n_in, n_out, n_mid, ni, nm, no = packed["dims"]
    same = packed["same"]
    mm_dtype = packed["mm_dtype"]
    act_dtype = packed["act_dtype"]
    B = x.shape[0]

    # Batch tiling: keep tiles large but padding < 8 rows per tile.
    n_tiles = -(-B // _MAX_TILE_B)
    tile_b = _round_up(-(-B // n_tiles), _SUBLANE)
    b_pad = n_tiles * tile_b
    n_pad = b_pad - B
    grid = (n_tiles,)

    xp = jnp.pad(x.astype(jnp.float32), ((0, n_pad), (0, ni - n_in))).astype(mm_dtype)

    row_spec = lambda f: pl.BlockSpec((tile_b, f), lambda i: (i, 0))
    const_spec = lambda r, c: pl.BlockSpec((r, c), lambda i: (0, 0))
    stat_spec = lambda f: pl.BlockSpec((None, _SUBLANE, f), lambda i: (i, 0, 0))
    stat_shape = lambda f: jax.ShapeDtypeStruct((n_tiles, _SUBLANE, f), jnp.float32)

    # -------- stage A: fused fc1(+fc3) matmul + per-tile bn1 stats ----------
    w13 = packed["w13"]
    in_specs_a = [row_spec(ni), const_spec(ni, w13.shape[1])]
    args_a = [xp, w13]
    out_shape_a = [jax.ShapeDtypeStruct((b_pad, nm), act_dtype)]
    out_specs_a = [row_spec(nm)]
    if not same:
        in_specs_a.append(const_spec(1, no))
        args_a.append(packed["b3"])
        out_shape_a.append(jax.ShapeDtypeStruct((b_pad, no), act_dtype))
        out_specs_a.append(row_spec(no))
    out_shape_a += [stat_shape(nm), stat_shape(nm)]
    out_specs_a += [stat_spec(nm), stat_spec(nm)]

    stream_a = (_nbytes((tile_b, ni), mm_dtype) + _nbytes((tile_b, nm), act_dtype)
                + (_nbytes((tile_b, no), act_dtype) if not same else 0)
                + 2 * _nbytes((_SUBLANE, nm), jnp.float32))
    resident_a = _nbytes(w13.shape, mm_dtype) + (_nbytes((1, no), jnp.float32) if not same else 0)

    res_a = pl.pallas_call(
        functools.partial(_stage_a_kernel, nm, not same),
        grid=grid,
        in_specs=in_specs_a, out_specs=out_specs_a, out_shape=out_shape_a,
        compiler_params=_compiler_params(stream_a, resident_a),
    )(*args_a)
    if same:
        h1_pre, s1p, ss1p = res_a
        skip = xp                                   # identity skip (ni == no)
    else:
        h1_pre, skip, s1p, ss1p = res_a

    # bn1 folded per-feature scale/shift (tiny [*, nm] XLA ops, true batch size B)
    s1 = s1p.reshape(-1, nm).sum(axis=0, keepdims=True)
    ss1 = ss1p.reshape(-1, nm).sum(axis=0, keepdims=True)
    mu1 = s1 / B
    var1 = jnp.maximum(ss1 / B - mu1 * mu1, 0.0)
    scale1 = packed["g1"] * jax.lax.rsqrt(var1 + _EPS)
    shift1 = packed["be1"] - mu1 * scale1

    # -------- stage B: bn1 + Mish + fc2 matmul + per-tile bn2 stats ---------
    stream_b = (_nbytes((tile_b, nm), act_dtype) + _nbytes((tile_b, no), act_dtype)
                + 2 * _nbytes((_SUBLANE, no), jnp.float32))
    resident_b = _nbytes((nm, no), mm_dtype) + 2 * _nbytes((1, nm), jnp.float32)

    h2_pre, s2p, ss2p = pl.pallas_call(
        _stage_b_kernel,
        grid=grid,
        in_specs=[row_spec(nm), const_spec(1, nm), const_spec(1, nm),
                  const_spec(nm, no)],
        out_specs=[row_spec(no), stat_spec(no), stat_spec(no)],
        out_shape=[jax.ShapeDtypeStruct((b_pad, no), act_dtype),
                   stat_shape(no), stat_shape(no)],
        compiler_params=_compiler_params(stream_b, resident_b),
    )(h1_pre, scale1, shift1, packed["w2"])

    s2 = s2p.reshape(-1, no).sum(axis=0, keepdims=True)
    ss2 = ss2p.reshape(-1, no).sum(axis=0, keepdims=True)

    if n_pad:
        # Padded batch rows have h1_pre == 0, so inside stage B each produces the
        # same constant row mish(shift1) @ w2; subtract that contribution here
        # instead of masking every tile in the kernel.
        pad_a = _mish(shift1).astype(packed["w2"].dtype)
        pad_h2 = jnp.dot(pad_a, packed["w2"],
                         precision=jax.lax.Precision.HIGHEST,
                         preferred_element_type=jnp.float32)
        s2 = s2 - n_pad * pad_h2
        ss2 = ss2 - n_pad * (pad_h2 * pad_h2)

    mu2 = s2 / B
    var2 = jnp.maximum(ss2 / B - mu2 * mu2, 0.0)
    scale2 = packed["g2"] * jax.lax.rsqrt(var2 + _EPS)
    shift2 = packed["be2"] - mu2 * scale2

    # -------- stage C: bn2 + residual add + Mish ----------------------------
    stream_c = 2 * _nbytes((tile_b, no), act_dtype) + _nbytes((tile_b, no), x.dtype)
    resident_c = 2 * _nbytes((1, no), jnp.float32)
    out_p = pl.pallas_call(
        _stage_c_kernel,
        grid=grid,
        in_specs=[row_spec(no), row_spec(no), const_spec(1, no), const_spec(1, no)],
        out_specs=row_spec(no),
        out_shape=jax.ShapeDtypeStruct((b_pad, no), x.dtype),
        compiler_params=_compiler_params(stream_c, resident_c),
    )(h2_pre, skip, scale2, shift2)

    return out_p[:B, :n_out]


# ---------------------------------------------------------------------------
# Pure-JAX reference (faithful to the PyTorch module, incl. b1/b2).
# ---------------------------------------------------------------------------
def _reference_forward(x, params, n_in, n_out):
    def mish(v):
        return v * jnp.tanh(jnp.logaddexp(v, 0.0))

    def bn(h, g, b):
        mu = jnp.mean(h, axis=0, keepdims=True)
        var = jnp.mean((h - mu) ** 2, axis=0, keepdims=True)
        return (h - mu) * jax.lax.rsqrt(var + _EPS) * g + b

    h1 = mish(bn(x @ params["w1"] + params["b1"], params["g1"], params["be1"]))
    h2 = bn(h1 @ params["w2"] + params["b2"], params["g2"], params["be2"])
    skip = x if n_in == n_out else x @ params["w3"] + params["b3"]
    return mish(h2 + skip)


if __name__ == "__main__":
    key = jax.random.PRNGKey(0)

    # Case 1: n_in != n_out -> projection (fc3) skip path, fp32.
    # Case 2: n_in == n_out, B not a multiple of 8 -> identity skip + padded-row stat fix.
    # Case 3: bf16 MXU operands + bf16 inter-stage activations (loose tolerance).
    cases = [
        (8, 32, 16, "fp32", 2e-4),
        (13, 32, 32, "fp32", 2e-4),
        (61, 48, 32, "bf16", 1.5e-1),
    ]
    for B, n_in, n_out, prec, tol in cases:
        k_x, k_p = jax.random.split(jax.random.fold_in(key, B * 101 + n_in * 7 + n_out))
        x = jax.random.normal(k_x, (B, n_in), dtype=jnp.float32)
        params = init_dual_resnet_params(k_p, n_in, n_out)

        packed = pack_params(params, n_in, n_out, precision=prec)
        out = jax.block_until_ready(dual_resnet_forward(x, packed))

        ref = _reference_forward(x, params, n_in, n_out)
        assert out.shape == (B, n_out)
        err = float(jnp.max(jnp.abs(out - ref)))
        assert jnp.allclose(out, ref, atol=tol, rtol=tol), (prec, err)

    print("KERNEL_OK")
</pallas_src>

<mosaic_0001>
module attributes {stable_mosaic.version = 11 : i64} {
  func.func @_stage_a_kernel(%arg0: i32, %arg1: memref<8x128xf32, #tpu.memory_space<vmem>>, %arg2: memref<128x256xf32, #tpu.memory_space<vmem>>, %arg3: memref<1x128xf32, #tpu.memory_space<vmem>>, %arg4: memref<8x128xf32, #tpu.memory_space<vmem>>, %arg5: memref<8x128xf32, #tpu.memory_space<vmem>>, %arg6: memref<1x8x128xf32, #tpu.memory_space<vmem>>, %arg7: memref<1x8x128xf32, #tpu.memory_space<vmem>>) attributes {dimension_semantics = [#tpu.dimension_semantics<parallel>], iteration_bounds = array<i64: 1>, scalar_prefetch = 0 : i64, scratch_operands = 0 : i64, tpu.core_type = #tpu.core_type<tc>, window_params = [{transform_indices = @transform_0, window_bounds = array<i64: 8, 128>}, {pipeline_mode = #tpu.pipeline_mode<synchronous>, transform_indices = @transform_1, window_bounds = array<i64: 128, 256>}, {pipeline_mode = #tpu.pipeline_mode<synchronous>, transform_indices = @transform_2, window_bounds = array<i64: 1, 128>}, {transform_indices = @transform_3, window_bounds = array<i64: 8, 128>}, {transform_indices = @transform_4, window_bounds = array<i64: 8, 128>}, {transform_indices = @transform_5, window_bounds = array<i64: 1, 8, 128>}, {transform_indices = @transform_6, window_bounds = array<i64: 1, 8, 128>}]} {
    %c0 = arith.constant 0 : index
    %c0_0 = arith.constant 0 : index
    %0 = vector.load %arg1[%c0, %c0_0] : memref<8x128xf32, #tpu.memory_space<vmem>>, vector<8x128xf32>
    %c0_1 = arith.constant 0 : index
    %c0_2 = arith.constant 0 : index
    %1 = vector.load %arg2[%c0_1, %c0_2] : memref<128x256xf32, #tpu.memory_space<vmem>>, vector<128x256xf32>
    %cst = arith.constant dense<0.000000e+00> : vector<8x256xf32>
    %2 = tpu.matmul %0, %1, %cst {dimension_numbers = #tpu.dot_dimension_numbers<[1], [0], [0], [1], [0, 0, 1, 1], [], []>} : vector<8x128xf32>, vector<128x256xf32>, vector<8x256xf32> -> vector<8x256xf32>
    %3 = vector.extract_strided_slice %2 {offsets = [0, 0], sizes = [8, 128], strides = [1, 1]} : vector<8x256xf32> to vector<8x128xf32>
    %c0_3 = arith.constant 0 : index
    %c0_4 = arith.constant 0 : index
    %4 = vector.load %arg4[%c0_3, %c0_4] : memref<8x128xf32, #tpu.memory_space<vmem>>, vector<8x128xf32>
    tpu.vector_store %arg4[%c0_3, %c0_4], %3 {strides = array<i32>} : memref<8x128xf32, #tpu.memory_space<vmem>>, vector<8x128xf32>,
    %5 = vector.extract_strided_slice %2 {offsets = [0, 128], sizes = [8, 128], strides = [1, 1]} : vector<8x256xf32> to vector<8x128xf32>
    %c0_5 = arith.constant 0 : index
    %c0_6 = arith.constant 0 : index
    %6 = vector.load %arg3[%c0_5, %c0_6] : memref<1x128xf32, #tpu.memory_space<vmem>>, vector<1x128xf32>
    %7 = vector.broadcast %6 : vector<1x128xf32> to vector<8x128xf32>
    %8 = arith.addf %5, %7 : vector<8x128xf32>
    %c0_7 = arith.constant 0 : index
    %c0_8 = arith.constant 0 : index
    %9 = vector.load %arg5[%c0_7, %c0_8] : memref<8x128xf32, #tpu.memory_space<vmem>>, vector<8x128xf32>
    tpu.vector_store %arg5[%c0_7, %c0_8], %8 {strides = array<i32>} : memref<8x128xf32, #tpu.memory_space<vmem>>, vector<8x128xf32>,
    %10 = vector.shape_cast %3 : vector<8x128xf32> to vector<1x8x128xf32>
    %cst_9 = arith.constant dense<0.000000e+00> : vector<8x128xf32>
    %11 = vector.multi_reduction <add>, %10, %cst_9 [0] : vector<1x8x128xf32> to vector<8x128xf32>
    %c0_10 = arith.constant 0 : index
    %c0_11 = arith.constant 0 : index
    %c0_12 = arith.constant 0 : index
    %12 = vector.load %arg6[%c0_10, %c0_11, %c0_12] : memref<1x8x128xf32, #tpu.memory_space<vmem>>, vector<1x8x128xf32>
    %13 = vector.shape_cast %12 : vector<1x8x128xf32> to vector<8x128xf32>
    %14 = vector.shape_cast %11 : vector<8x128xf32> to vector<1x8x128xf32>
    tpu.vector_store %arg6[%c0_10, %c0_11, %c0_12], %14 {strides = array<i32>} : memref<1x8x128xf32, #tpu.memory_space<vmem>>, vector<1x8x128xf32>,
    %15 = arith.mulf %10, %10 : vector<1x8x128xf32>
    %cst_13 = arith.constant dense<0.000000e+00> : vector<8x128xf32>
    %16 = vector.multi_reduction <add>, %15, %cst_13 [0] : vector<1x8x128xf32> to vector<8x128xf32>
    %c0_14 = arith.constant 0 : index
    %c0_15 = arith.constant 0 : index
    %c0_16 = arith.constant 0 : index
    %17 = vector.load %arg7[%c0_14, %c0_15, %c0_16] : memref<1x8x128xf32, #tpu.memory_space<vmem>>, vector<1x8x128xf32>
    %18 = vector.shape_cast %17 : vector<1x8x128xf32> to vector<8x128xf32>
    %19 = vector.shape_cast %16 : vector<8x128xf32> to vector<1x8x128xf32>
    tpu.vector_store %arg7[%c0_14, %c0_15, %c0_16], %19 {strides = array<i32>} : memref<1x8x128xf32, #tpu.memory_space<vmem>>, vector<1x8x128xf32>,
    return
  }
  func.func @transform_0(%arg0: i32) -> (i32, i32) {
    %c0_i32 = arith.constant 0 : i32
    %c0_i32_0 = arith.constant 0 : i32
    return %arg0, %c0_i32 : i32, i32
  }
  func.func @transform_1(%arg0: i32) -> (i32, i32) {
    %c0_i32 = arith.constant 0 : i32
    %c0_i32_0 = arith.constant 0 : i32
    %c0_i32_1 = arith.constant 0 : i32
    return %c0_i32, %c0_i32_0 : i32, i32
  }
  func.func @transform_2(%arg0: i32) -> (i32, i32) {
    %c0_i32 = arith.constant 0 : i32
    %c0_i32_0 = arith.constant 0 : i32
    %c0_i32_1 = arith.constant 0 : i32
    return %c0_i32, %c0_i32_0 : i32, i32
  }
  func.func @transform_3(%arg0: i32) -> (i32, i32) {
    %c0_i32 = arith.constant 0 : i32
    %c0_i32_0 = arith.constant 0 : i32
    return %arg0, %c0_i32 : i32, i32
  }
  func.func @transform_4(%arg0: i32) -> (i32, i32) {
    %c0_i32 = arith.constant 0 : i32
    %c0_i32_0 = arith.constant 0 : i32
    return %arg0, %c0_i32 : i32, i32
  }
  func.func @transform_5(%arg0: i32) -> (i32, i32, i32) {
    %c0_i32 = arith.constant 0 : i32
    %c0_i32_0 = arith.constant 0 : i32
    %c0_i32_1 = arith.constant 0 : i32
    return %arg0, %c0_i32, %c0_i32_0 : i32, i32, i32
  }
  func.func @transform_6(%arg0: i32) -> (i32, i32, i32) {
    %c0_i32 = arith.constant 0 : i32
    %c0_i32_0 = arith.constant 0 : i32
    %c0_i32_1 = arith.constant 0 : i32
    return %arg0, %c0_i32, %c0_i32_0 : i32, i32, i32
  }
}

</mosaic_0001>

<bundles_post_ra>
// kernel: tpu_custom_call.1
= control target key start
LH: loop header
LB: loop body
LE: loop exit
PB: predicated region body
PF: predicated region fallthrough
CT: control target
= control target key end

     0   :  { %12 = vsyncpa [#allocation3], 0  ;;  %s428_s0 = inlined_call_operand.hbm [shape: f32[8,128], index: 0, kind: input, shape index: {}]   ;;  %s429_s1 = inlined_call_operand.hbm [shape: f32[128,256], index: 1, kind: input, shape index: {}]   ;;  %s430_s2 = inlined_call_operand.vmem [shape: f32[1,128], index: 2, kind: input, shape index: {}]   ;;  %s431_s3 = inlined_call_operand.hbm [shape: f32[8,128], index: 3, kind: output, shape index: {0}]   ;;  %s432_s4 = inlined_call_operand.hbm [shape: f32[8,128], index: 4, kind: output, shape index: {1}]   ;;  %s433_s5 = inlined_call_operand.hbm [shape: f32[1,8,128], index: 5, kind: output, shape index: {2}]   ;;  %s434_s6 = inlined_call_operand.hbm [shape: f32[1,8,128], index: 6, kind: output, shape index: {3}]  }
   0x1   :  { %13 = vsyncpa [#allocation6], 0 }
   0x2   :  { %14 = vsyncpa [#allocation4], 0 }
   0x3   :  { %15 = vsyncpa [#allocation9], 0 }
   0x4   :  { %16 = vsyncpa [#allocation12], 0  ;;  %s363_s21 = smov [#allocation2]   ;;  %s364_s23 = smov [#allocation5]  }
   0x5   :  { %s23_s22 = sshll.u32 %s363_s21, 4  ;;  %s32_s24 = sshll.u32 %s364_s23, 4  ;;  %s24_s22 = int_to_ptr.vmem [resolvable:$true] %s23_s22  ;;  %s33_s24 = int_to_ptr.vmem [resolvable:$true] %s32_s24 }
   0x6   :  { %s241_s25 = scalar_lea.vmem %s24_s22, 128  ;;  %p246_p1 = scmp.lt.s32.totalorder %s24_s22, %s24_s22 }
   0x7   :  { %p242_p0 = scmp.ne.s32.totalorder %s24_s22, %s241_s25  ;;  %p247_p2 = scmp.lt.s32.totalorder %s241_s25, %s241_s25 }
   0x9   :  { %p248_p3 = por %p247_p2, %p246_p1 }
   0xb   :  { %p249_p4 = pnand %p248_p3, %p242_p0 }
   0xd   :  { %252 = shalt.err (!%p249_p4)
}
   0xe   :  { %26 = dma.hbm_to_vmem [thread:$0]  %s428_s0, 128, %s24_s22, [#allocation3]  }
   0xf   :  { %s261_s28 = scalar_lea.vmem %s33_s24, 4096  ;;  %p266_p6 = scmp.lt.s32.totalorder %s33_s24, %s33_s24 }
  0x10   :  { %p262_p5 = scmp.ne.s32.totalorder %s33_s24, %s261_s28  ;;  %p267_p7 = scmp.lt.s32.totalorder %s261_s28, %s261_s28 }
  0x12   :  { %p268_p8 = por %p267_p7, %p266_p6 }
  0x14   :  { %p269_p9 = pnand %p268_p8, %p262_p5 }
  0x16   :  { %272 = shalt.err (!%p269_p9)
}
  0x17   :  { %s365_s29 = smov 256   ;;  %s366_s30 = smov 16  }
  0x18   :  { %38 = dma.hbm_to_vmem [thread:$0]  %s429_s1, 4096, %s33_s24, [#allocation6], %s365_s29, %s365_s29, %s366_s30  }
  0x19   :  { %353 = dma.done.wait [#allocation3], 128  }
  0x1a   :  { %354 = vsyncadd [#allocation3], 4294967168 }
  0x1b   :  { %355 = dma.done.wait [#allocation6], 4096  }
  0x1c   :  { %356 = vsyncadd [#allocation6], 4294963200  ;;  %v367_v0 = vmov 0.0   ;;  %v79_v1 = vld [vmem:[#allocation5 + $0xf8] sm:$0xff]  ;;  %v78_v2 = vld [vmem:[#allocation5 + $0xf0] sm:$0xff]  ;;  %s368_s0 = smov [#allocation7]  }
  0x1d   :  { %144 = vmatprep.mubr.f32.mxu0 %v367_v0  ;;  %v77_v3 = vld [vmem:[#allocation5 + $0xe8] sm:$0xff]  ;;  %80 = vmatprep.subr.mxu0 %v79_v1  ;;  %v76_v4 = vld [vmem:[#allocation5 + $0xe0] sm:$0xff]  ;;  %v75_v5 = vld [vmem:[#allocation5 + $0xd8] sm:$0xff]  ;;  %s172_s1 = sshll.u32 %s368_s0, 4  ;;  %s369_s9 = smov [#allocation11]   ;;  %s173_s1 = int_to_ptr.vmem [resolvable:$true] %s172_s1 }
  0x1e   :  { %81 = vmatpush1.msra.mxu0 %v78_v2  ;;  %v74_v6 = vld [vmem:[#allocation5 + $0xd0] sm:$0xff]  ;;  %v73_v7 = vld [vmem:[#allocation5 + $0xc8] sm:$0xff]  ;;  %v72_v8 = vld [vmem:[#allocation5 + $0xc0] sm:$0xff]  ;;  %s202_s10 = sshll.u32 %s369_s9, 4  ;;  %s370_s13 = smov [#allocation8]   ;;  %s203_s10 = int_to_ptr.vmem [resolvable:$true] %s202_s10 }
  0x1f   :  { %82 = vmatprep.subr.mxu0 %v77_v3  ;;  %v71_v9 = vld [vmem:[#allocation5 + $0xb8] sm:$0xff]  ;;  %v70_v10 = vld [vmem:[#allocation5 + $0xb0] sm:$0xff]  ;;  %v69_v11 = vld [vmem:[#allocation5 + $0xa8] sm:$0xff]  ;;  %s182_s14 = sshll.u32 %s370_s13, 4  ;;  %s371_s15 = smov [#allocation10]   ;;  %s183_s14 = int_to_ptr.vmem [resolvable:$true] %s182_s14 }
  0x20   :  { %83 = vmatpush1.msra.mxu0 %v76_v4  ;;  %v68_v12 = vld [vmem:[#allocation5 + $0xa0] sm:$0xff]  ;;  %v67_v13 = vld [vmem:[#allocation5 + $0x98] sm:$0xff]  ;;  %v66_v14 = vld [vmem:[#allocation5 + $0x90] sm:$0xff]  ;;  %s192_s16 = sshll.u32 %s371_s15, 4  ;;  %s273_s17 = scalar_lea.vmem %s173_s1, 128  ;;  %s193_s16 = int_to_ptr.vmem [resolvable:$true] %s192_s16 }
  0x21   :  { %84 = vmatprep.subr.mxu0 %v75_v5  ;;  %v65_v15 = vld [vmem:[#allocation5 + $0x88] sm:$0xff]  ;;  %v64_v16 = vld [vmem:[#allocation5 + $0x80] sm:$0xff]  ;;  %v63_v17 = vld [vmem:[#allocation5 + $0x78] sm:$0xff]  ;;  %p274_p10 = scmp.ne.s32.totalorder %s173_s1, %s273_s17  ;;  %p278_p11 = scmp.lt.s32.totalorder %s173_s1, %s173_s1 }
  0x22   :  { %85 = vmatpush1.msra.mxu0 %v74_v6  ;;  %v62_v18 = vld [vmem:[#allocation5 + $0x70] sm:$0xff]  ;;  %v61_v19 = vld [vmem:[#allocation5 + $0x68] sm:$0xff]  ;;  %v60_v20 = vld [vmem:[#allocation5 + $0x60] sm:$0xff]  ;;  %p279_p12 = scmp.lt.s32.totalorder %s273_s17, %s273_s17 }
  0x23   :  { %86 = vmatprep.subr.mxu0 %v73_v7  ;;  %v59_v21 = vld [vmem:[#allocation5 + $0x58] sm:$0xff]  ;;  %v58_v22 = vld [vmem:[#allocation5 + $0x50] sm:$0xff]  ;;  %v57_v23 = vld [vmem:[#allocation5 + $0x48] sm:$0xff] }
  0x24   :  { %87 = vmatpush1.msra.mxu0 %v72_v8  ;;  %v56_v24 = vld [vmem:[#allocation5 + $0x40] sm:$0xff]  ;;  %v55_v25 = vld [vmem:[#allocation5 + $0x38] sm:$0xff]  ;;  %v54_v26 = vld [vmem:[#allocation5 + $0x30] sm:$0xff]  ;;  %p280_p13 = por %p279_p12, %p278_p11 }
  0x25   :  { %88 = vmatprep.subr.mxu0 %v71_v9  ;;  %v53_v27 = vld [vmem:[#allocation5 + $0x28] sm:$0xff]  ;;  %v52_v28 = vld [vmem:[#allocation5 + $0x20] sm:$0xff]  ;;  %v51_v29 = vld [vmem:[#allocation5 + $0x18] sm:$0xff] }
  0x26   :  { %89 = vmatpush1.msra.mxu0 %v70_v10  ;;  %v50_v30 = vld [vmem:[#allocation5 + $0x10] sm:$0xff]  ;;  %v49_v31 = vld [vmem:[#allocation5 + $0x8] sm:$0xff]  ;;  %v48_v32 = vld [vmem:[#allocation5] sm:$0xff]  ;;  %p281_p0 = pnand %p280_p13, %p274_p10 }
  0x27   :  { %90 = vmatprep.subr.mxu0 %v69_v11  ;;  %v47_v33 = vld [vmem:[#allocation2] sm:$0xff] }
  0x28   :  { %91 = vmatpush1.msra.mxu0 %v68_v12  ;;  %v223_v35 = vld [vmem:[%s430_s2] ss:$0 sm:$0xff] }
  0x29   :  { %92 = vmatprep.subr.mxu0 %v67_v13 }
  0x2a   :  { %93 = vmatpush1.msra.mxu0 %v66_v14 }
  0x2b   :  { %94 = vmatprep.subr.mxu0 %v65_v15 }
  0x2c   :  { %95 = vmatpush1.msra.mxu0 %v64_v16 }
  0x2d   :  { %96 = vmatprep.subr.mxu0 %v63_v17 }
  0x2e   :  { %97 = vmatpush1.msra.mxu0 %v62_v18 }
  0x2f   :  { %98 = vmatprep.subr.mxu0 %v61_v19 }
  0x30   :  { %99 = vmatpush1.msra.mxu0 %v60_v20 }
  0x31   :  { %100 = vmatprep.subr.mxu0 %v59_v21 }
  0x32   :  { %101 = vmatpush1.msra.mxu0 %v58_v22 }
  0x33   :  { %102 = vmatprep.subr.mxu0 %v57_v23 }
  0x34   :  { %103 = vmatpush1.msra.mxu0 %v56_v24 }
  0x35   :  { %104 = vmatprep.subr.mxu0 %v55_v25 }
  0x36   :  { %105 = vmatpush1.msra.mxu0 %v54_v26 }
  0x37   :  { %106 = vmatprep.subr.mxu0 %v53_v27 }
  0x38   :  { %107 = vmatpush1.msra.mxu0 %v52_v28 }
  0x39   :  { %108 = vmatprep.subr.mxu0 %v51_v29 }
  0x3a   :  { %109 = vmatpush1.msra.mxu0 %v50_v30 }
  0x3b   :  { %110 = vmatprep.subr.mxu0 %v49_v31 }
  0x3c   :  { %111 = vmatpush1.msra.mxu0 %v48_v32 }
  0x3d   :  { %145 = vmatmul.mubr.f32.vlgmr.msra.gmra.mxu0 %v47_v33 }
  0xfd   :  { %v146_v34 = vpop.f32.mrf.mxu0 }
  0xfe   :  { %v163_v36 = vmul.f32 %v146_v34, %v146_v34  ;;  %151 = vst [vmem:[#allocation7] sm:$0xff] %v146_v34  ;;  %162 = vst [vmem:[#allocation10] sm:$0xff] %v146_v34 }
  0xff   :  { %v148_v37 = vpop.f32.mrf.mxu0 }
 0x100   :  { %284 = shalt.err (!%p281_p0)
}
 0x101   :  { %175 = dma.vmem_to_hbm [thread:$0]  %s173_s1, 128, %s431_s3, [#allocation4]   ;;  %165 = vst [vmem:[#allocation11] sm:$0xff] %v163_v36  ;;  %v159_v38 = vadd.f32 %v223_v35, %v148_v37 }
 0x102   :  { %s293_s2 = scalar_lea.vmem %s203_s10, 128  ;;  %p298_p2 = scmp.lt.s32.totalorder %s203_s10, %s203_s10 }
 0x103   :  { %p294_p1 = scmp.ne.s32.totalorder %s203_s10, %s293_s2  ;;  %p299_p3 = scmp.lt.s32.totalorder %s293_s2, %s293_s2 }
 0x105   :  { %p300_p4 = por %p299_p3, %p298_p2 }
 0x107   :  { %p301_p5 = pnand %p300_p4, %p294_p1 }
 0x109   :  { %304 = shalt.err (!%p301_p5)
}
 0x10a   :  { %205 = dma.vmem_to_hbm [thread:$0]  %s203_s10, 128, %s434_s6, [#allocation12]   ;;  %160 = vst [vmem:[#allocation8] sm:$0xff] %v159_v38 }
 0x10b   :  { %s313_s22 = scalar_lea.vmem %s183_s14, 128  ;;  %p318_p7 = scmp.lt.s32.totalorder %s183_s14, %s183_s14 }
 0x10c   :  { %p314_p6 = scmp.ne.s32.totalorder %s183_s14, %s313_s22  ;;  %p319_p8 = scmp.lt.s32.totalorder %s313_s22, %s313_s22 }
 0x10e   :  { %p320_p9 = por %p319_p8, %p318_p7 }
 0x110   :  { %p321_p10 = pnand %p320_p9, %p314_p6 }
 0x112   :  { %324 = shalt.err (!%p321_p10)
}
 0x113   :  { %185 = dma.vmem_to_hbm [thread:$0]  %s183_s14, 128, %s432_s4, [#allocation9]  }
 0x114   :  { %s333_s24 = scalar_lea.vmem %s193_s16, 128  ;;  %p338_p12 = scmp.lt.s32.totalorder %s193_s16, %s193_s16 }
 0x115   :  { %p334_p11 = scmp.ne.s32.totalorder %s193_s16, %s333_s24  ;;  %p339_p13 = scmp.lt.s32.totalorder %s333_s24, %s333_s24 }
 0x117   :  { %p340_p0 = por %p339_p13, %p338_p12 }
 0x119   :  { %p341_p1 = pnand %p340_p0, %p334_p11 }
 0x11b   :  { %344 = shalt.err (!%p341_p1)
}
 0x11c   :  { %195 = dma.vmem_to_hbm [thread:$0]  %s193_s16, 128, %s433_s5, [#allocation9]  }
 0x11d   :  { %357 = dma.done.wait [#allocation4], 128  }
 0x11e   :  { %358 = vsyncadd [#allocation4], 4294967168 }
 0x11f   :  { %359 = dma.done.wait [#allocation9], 256  }
 0x120   :  { %360 = vsyncadd [#allocation9], 4294967040 }
 0x121   :  { %361 = dma.done.wait [#allocation12], 128  }
 0x122   :  { %362 = vsyncadd [#allocation12], 4294967168 }
 0x123   :  { %218 = vsyncpa [#allocation3], 1 }
 0x124   :  { %219 = vsyncpa [#allocation6], 1 }
 0x125   :  { %220 = vsyncpa [#allocation4], 1 }
 0x126   :  { %221 = vsyncpa [#allocation9], 1 }
 0x127   :  { %222 = vsyncpa [#allocation12], 1 }

</bundles_post_ra>
